<compile_context>
chip_gen: v6e
topology: v6e:2x2x1
jax: 0.10.0
libtpu: 0.0.40
codegen_flags: <defaults>
</compile_context>

<pallas_src>
import functools

import jax
import jax.numpy as jnp
from jax.experimental import pallas as pl
from jax.experimental.pallas import tpu as pltpu

EPS = 1e-5
LANE = 128
TM_DEFAULT = 512                       # conv1 row-tile (feedback: 256-512)
VMEM_LIMIT_BYTES = 48 * 1024 * 1024    # fits v7x's 64 MiB physical VMEM


def _cparams(dims):
    return pltpu.CompilerParams(dimension_semantics=dims,
                                vmem_limit_bytes=VMEM_LIMIT_BYTES)


def _ceil_to(x, m):
    return (x + m - 1) // m * m


def _pad_last(a, target):
    pad = target - a.shape[-1]
    if pad == 0:
        return a
    return jnp.pad(a, [(0, 0)] * (a.ndim - 1) + [(0, pad)])


# ----------------------------------------------------------------------------
# Kernels
# ----------------------------------------------------------------------------
def _conv1x1_bn_relu_kernel(x_ref, w_ref, b_ref, o_ref):
    """1x1 conv (row-tiled matmul) + BN shift + ReLU.  BN scale folded in w."""
    y = jnp.dot(x_ref[...], w_ref[...], preferred_element_type=jnp.float32)
    y = y + b_ref[...]
    o_ref[...] = jnp.maximum(y, 0.0).astype(o_ref.dtype)


def _conv3x3_bn_relu_kernel(x_ref, w_ref, b_ref, o_ref, acc_ref,
                            *, stride, nb, wo, c_p):
    """3x3 conv: grid = (output_row, ky).  ky is the reduction axis.

    x_ref : (N, Wblk, Cblk) one padded input row (all batch elements).
            stride==2: Wblk = Wp//2, Cblk = 2*Cin_p (even/odd columns in lanes)
    w_ref : (3, Cin_p, Cout_p)  taps for this ky, BN scale folded in.
    acc_ref: (N, WO, Cout_p) f32 VMEM scratch accumulator.
    """
    ky = pl.program_id(1)

    @pl.when(ky == 0)
    def _init():
        acc_ref[...] = jnp.zeros_like(acc_ref)

    for kx in range(3):
        w_kx = w_ref[kx]                                     # (Cin_p, Cout_p)
        for n in range(nb):
            if stride == 1:
                xs = x_ref[n, kx:kx + wo, :]                 # (WO, Cin_p)
            else:  # stride == 2: column parity lives in the lane dimension
                p, q = kx % 2, kx // 2
                xs = x_ref[n, q:q + wo, p * c_p:(p + 1) * c_p]
            acc_ref[n] += jnp.dot(xs, w_kx,
                                  preferred_element_type=jnp.float32)

    @pl.when(ky == pl.num_programs(1) - 1)
    def _finalize():
        y = acc_ref[...] + b_ref[...]
        o_ref[...] = jnp.maximum(y, 0.0).astype(o_ref.dtype)


def _conv1x1_add_relu_proj_kernel(h2_ref, x_ref, w3_ref, b3_ref, ws_ref,
                                  bs_ref, o_ref, *, stride, nb, wo, cin_p):
    """Fused: conv3 (1x1) + BN + projection-shortcut (1x1 conv + BN) + add + ReLU."""
    for n in range(nb):
        y = jnp.dot(h2_ref[n], w3_ref[...], preferred_element_type=jnp.float32)
        if stride == 1:
            xs = x_ref[n]                          # (WO, Cin_p)  (W == WO)
        else:
            xs = x_ref[n, 0:wo, 0:cin_p]           # even columns (parity fold)
        y = y + jnp.dot(xs, ws_ref[...], preferred_element_type=jnp.float32)
        y = y + b3_ref[...] + bs_ref[...]
        o_ref[n] = jnp.maximum(y, 0.0).astype(o_ref.dtype)


def _conv1x1_add_relu_id_kernel(h2_ref, x_ref, w3_ref, b3_ref, o_ref, *, nb):
    """Fused: conv3 (1x1) + BN + identity-shortcut add + ReLU."""
    for n in range(nb):
        y = jnp.dot(h2_ref[n], w3_ref[...], preferred_element_type=jnp.float32)
        y = y + b3_ref[...] + x_ref[n].astype(jnp.float32)
        o_ref[n] = jnp.maximum(y, 0.0).astype(o_ref.dtype)


# ----------------------------------------------------------------------------
# pallas_call wrappers
# ----------------------------------------------------------------------------
def _conv1x1_bn_relu(x2d, w, shift, tm=TM_DEFAULT):
    m, cin_p = x2d.shape
    cout_p = w.shape[1]
    tm = min(tm, _ceil_to(m, 8))
    return pl.pallas_call(
        _conv1x1_bn_relu_kernel,
        out_shape=jax.ShapeDtypeStruct((m, cout_p), jnp.bfloat16),
        grid=(pl.cdiv(m, tm),),
        in_specs=[pl.BlockSpec((tm, cin_p), lambda i: (i, 0)),
                  pl.BlockSpec((cin_p, cout_p), lambda i: (0, 0)),
                  pl.BlockSpec((1, cout_p), lambda i: (0, 0))],
        out_specs=pl.BlockSpec((tm, cout_p), lambda i: (i, 0)),
        compiler_params=_cparams(("parallel",)),
    )(x2d, w, shift)


def _conv3x3_bn_relu(h1p, w2, shift, *, stride, nb, ho, wo, cmid_p):
    wdim, cdim = h1p.shape[2], h1p.shape[3]
    kernel = functools.partial(_conv3x3_bn_relu_kernel,
                               stride=stride, nb=nb, wo=wo, c_p=cmid_p)
    return pl.pallas_call(
        kernel,
        out_shape=jax.ShapeDtypeStruct((ho, nb, wo, cmid_p), jnp.bfloat16),
        grid=(ho, 3),
        in_specs=[
            pl.BlockSpec((None, nb, wdim, cdim),
                         lambda oh, ky: (stride * oh + ky, 0, 0, 0)),
            pl.BlockSpec((None, 3, cmid_p, cmid_p),
                         lambda oh, ky: (ky, 0, 0, 0)),
            pl.BlockSpec((1, cmid_p), lambda oh, ky: (0, 0)),
        ],
        out_specs=pl.BlockSpec((None, nb, wo, cmid_p),
                               lambda oh, ky: (oh, 0, 0, 0)),
        scratch_shapes=[pltpu.VMEM((nb, wo, cmid_p), jnp.float32)],
        compiler_params=_cparams(("parallel", "arbitrary")),
    )(h1p, w2, shift)


def _conv3_fused_proj(h2, xsc, w3, b3, ws, bs, *, stride, nb, ho, wo,
                      cin_p, c4_p):
    cmid_p = h2.shape[-1]
    wx, cx = xsc.shape[2], xsc.shape[3]
    kernel = functools.partial(_conv1x1_add_relu_proj_kernel,
                               stride=stride, nb=nb, wo=wo, cin_p=cin_p)
    return pl.pallas_call(
        kernel,
        out_shape=jax.ShapeDtypeStruct((ho, nb, wo, c4_p), jnp.float32),
        grid=(ho,),
        in_specs=[
            pl.BlockSpec((None, nb, wo, cmid_p), lambda oh: (oh, 0, 0, 0)),
            pl.BlockSpec((None, nb, wx, cx),
                         lambda oh: (stride * oh, 0, 0, 0)),
            pl.BlockSpec((cmid_p, c4_p), lambda oh: (0, 0)),
            pl.BlockSpec((1, c4_p), lambda oh: (0, 0)),
            pl.BlockSpec((cin_p, c4_p), lambda oh: (0, 0)),
            pl.BlockSpec((1, c4_p), lambda oh: (0, 0)),
        ],
        out_specs=pl.BlockSpec((None, nb, wo, c4_p), lambda oh: (oh, 0, 0, 0)),
        compiler_params=_cparams(("parallel",)),
    )(h2, xsc, w3, b3, ws, bs)


def _conv3_fused_id(h2, x_hnwc, w3, b3, *, nb, ho, wo, c4_p):
    cmid_p = h2.shape[-1]
    kernel = functools.partial(_conv1x1_add_relu_id_kernel, nb=nb)
    return pl.pallas_call(
        kernel,
        out_shape=jax.ShapeDtypeStruct((ho, nb, wo, c4_p), jnp.float32),
        grid=(ho,),
        in_specs=[
            pl.BlockSpec((None, nb, wo, cmid_p), lambda oh: (oh, 0, 0, 0)),
            pl.BlockSpec((None, nb, wo, c4_p), lambda oh: (oh, 0, 0, 0)),
            pl.BlockSpec((cmid_p, c4_p), lambda oh: (0, 0)),
            pl.BlockSpec((1, c4_p), lambda oh: (0, 0)),
        ],
        out_specs=pl.BlockSpec((None, nb, wo, c4_p), lambda oh: (oh, 0, 0, 0)),
        compiler_params=_cparams(("parallel",)),
    )(h2, x_hnwc, w3, b3)


# ----------------------------------------------------------------------------
# Parameter construction / BN folding
# ----------------------------------------------------------------------------
def _fold_bn(gamma, beta, mean, var):
    scale = gamma * jax.lax.rsqrt(var + EPS)
    shift = beta - mean * scale
    return scale.astype(jnp.float32), shift.astype(jnp.float32)


def _prep_w_1x1(w_oihw, scale, cin_p, cout_p):
    """(O, I, 1, 1) -> (Ip, Op) bf16 with BN scale folded into output channels."""
    w = w_oihw[:, :, 0, 0].T * scale[None, :]
    w = jnp.pad(w, ((0, cin_p - w.shape[0]), (0, cout_p - w.shape[1])))
    return w.astype(jnp.bfloat16)


def _prep_w_3x3(w_oihw, scale, cin_p, cout_p):
    """(O, I, 3, 3) -> (3, 3, Ip, Op) bf16 with BN scale folded in."""
    w = jnp.transpose(w_oihw, (2, 3, 1, 0)) * scale[None, None, None, :]
    w = jnp.pad(w, ((0, 0), (0, 0),
                    (0, cin_p - w.shape[2]), (0, cout_p - w.shape[3])))
    return w.astype(jnp.bfloat16)


def make_bottleneck_params(key, in_channels, out_channels, stride):
    """Weights in PyTorch OIHW layout + BN params; deterministic from `key`."""
    expansion = 4
    c4 = out_channels * expansion
    keys = jax.random.split(key, 16)

    def bn_params(k, c):
        k1, k2, k3, k4 = jax.random.split(k, 4)
        gamma = 1.0 + 0.1 * jax.random.normal(k1, (c,), jnp.float32)
        beta = 0.1 * jax.random.normal(k2, (c,), jnp.float32)
        mean = 0.1 * jax.random.normal(k3, (c,), jnp.float32)
        var = 1.0 + 0.1 * jnp.abs(jax.random.normal(k4, (c,), jnp.float32))
        return gamma, beta, mean, var

    p = {
        "w1": 0.1 * jax.random.normal(keys[0], (out_channels, in_channels, 1, 1), jnp.float32),
        "bn1": bn_params(keys[1], out_channels),
        "w2": 0.1 * jax.random.normal(keys[2], (out_channels, out_channels, 3, 3), jnp.float32),
        "bn2": bn_params(keys[3], out_channels),
        "w3": 0.1 * jax.random.normal(keys[4], (c4, out_channels, 1, 1), jnp.float32),
        "bn3": bn_params(keys[5], c4),
        "has_shortcut": (stride != 1 or in_channels != c4),
    }
    if p["has_shortcut"]:
        p["ws"] = 0.1 * jax.random.normal(keys[6], (c4, in_channels, 1, 1), jnp.float32)
        p["bns"] = bn_params(keys[7], c4)
    return p


# ----------------------------------------------------------------------------
# Forward pass
# ----------------------------------------------------------------------------
def bottleneck_forward(x_nchw, params, stride):
    """Pallas implementation of BottleNeck.forward.  Input/output NCHW."""
    assert stride in (1, 2), "only ResNet strides {1, 2} supported"
    n, cin, h, w = x_nchw.shape
    cmid = params["w1"].shape[0]
    c4 = params["w3"].shape[0]
    cin_p = _ceil_to(cin, LANE)
    cmid_p = _ceil_to(cmid, LANE)
    c4_p = _ceil_to(c4, LANE)
    ho = (h - 1) // stride + 1
    wo = (w - 1) // stride + 1

    # NCHW -> (H, N, W, C) so a fixed image row is contiguous across the batch.
    x_hnwc = jnp.transpose(x_nchw, (2, 0, 3, 1))
    x_hnwc = _pad_last(x_hnwc, cin_p).astype(jnp.bfloat16)

    # ---- conv1: 1x1 + BN + ReLU, tiled over rows ----------------------------
    s1, b1 = _fold_bn(*params["bn1"])
    w1 = _prep_w_1x1(params["w1"], s1, cin_p, cmid_p)
    b1 = _pad_last(b1[None, :], cmid_p)
    m1 = h * n * w
    h1 = _conv1x1_bn_relu(x_hnwc.reshape(m1, cin_p), w1, b1)
    h1 = h1.reshape(h, n, w, cmid_p)                       # bf16, HNWC

    # ---- conv2: 3x3 (stride, pad=1) + BN + ReLU ------------------------------
    s2, b2 = _fold_bn(*params["bn2"])
    w2 = _prep_w_3x3(params["w2"], s2, cmid_p, cmid_p)
    b2 = _pad_last(b2[None, :], cmid_p)
    wp = w + 2
    w_extra = (wp % 2) if stride == 2 else 0
    h1p = jnp.pad(h1, ((1, 1), (0, 0), (1, 1 + w_extra), (0, 0)))
    if stride == 2:
        # free reshape: fold even/odd columns into the lane dim.
        h1p = h1p.reshape(h + 2, n, (wp + w_extra) // 2, 2 * cmid_p)
    h2 = _conv3x3_bn_relu(h1p, w2, b2, stride=stride, nb=n, ho=ho, wo=wo,
                          cmid_p=cmid_p)                   # (HO, N, WO, Cmid_p)

    # ---- conv3 (1x1) + BN + shortcut + add + ReLU, fused ---------------------
    s3, b3 = _fold_bn(*params["bn3"])
    w3 = _prep_w_1x1(params["w3"], s3, cmid_p, c4_p)
    b3 = _pad_last(b3[None, :], c4_p)
    if params["has_shortcut"]:
        ss, bs = _fold_bn(*params["bns"])
        ws = _prep_w_1x1(params["ws"], ss, cin_p, c4_p)
        bs = _pad_last(bs[None, :], c4_p)
        xsc = x_hnwc
        if stride == 2:
            wx_extra = w % 2
            if wx_extra:
                xsc = jnp.pad(xsc, ((0, 0), (0, 0), (0, wx_extra), (0, 0)))
            xsc = xsc.reshape(h, n, (w + wx_extra) // 2, 2 * cin_p)
        out = _conv3_fused_proj(h2, xsc, w3, b3, ws, bs, stride=stride,
                                nb=n, ho=ho, wo=wo, cin_p=cin_p, c4_p=c4_p)
    else:
        out = _conv3_fused_id(h2, x_hnwc, w3, b3, nb=n, ho=ho, wo=wo,
                              c4_p=c4_p)

    out = out[..., :c4]                                    # drop channel pad
    return jnp.transpose(out, (1, 3, 0, 2))                # (N, C4, HO, WO)


# ----------------------------------------------------------------------------
# Pure-JAX reference (mirrors the PyTorch module, inference-mode BN)
# ----------------------------------------------------------------------------
def bottleneck_reference(x, params, stride):
    def conv(x, w, s=1, p=0):
        return jax.lax.conv_general_dilated(
            x, w, (s, s), [(p, p), (p, p)],
            dimension_numbers=("NCHW", "OIHW", "NCHW"))

    def bn(x, bnp):
        gamma, beta, mean, var = bnp
        sc = gamma / jnp.sqrt(var + EPS)
        return x * sc[None, :, None, None] + (beta - mean * sc)[None, :, None, None]

    r = jax.nn.relu(bn(conv(x, params["w1"]), params["bn1"]))
    r = jax.nn.relu(bn(conv(r, params["w2"], s=stride, p=1), params["bn2"]))
    r = bn(conv(r, params["w3"]), params["bn3"])
    if params["has_shortcut"]:
        s = bn(conv(x, params["ws"], s=stride), params["bns"])
    else:
        s = x
    return jax.nn.relu(r + s)


# ----------------------------------------------------------------------------
if __name__ == "__main__":
    key = jax.random.PRNGKey(0)
    configs = [
        dict(n=2, cin=16, h=8, w=8, cout=8, stride=2),   # projection shortcut
        dict(n=2, cin=32, h=8, w=8, cout=8, stride=1),   # identity shortcut
    ]
    for i, cfg in enumerate(configs):
        k_x, k_p = jax.random.split(jax.random.fold_in(key, i))
        x = jax.random.normal(k_x, (cfg["n"], cfg["cin"], cfg["h"], cfg["w"]),
                              jnp.float32)
        params = make_bottleneck_params(k_p, cfg["cin"], cfg["cout"],
                                        cfg["stride"])
        out = jax.block_until_ready(bottleneck_forward(x, params, cfg["stride"]))
        ref = jax.block_until_ready(bottleneck_reference(x, params, cfg["stride"]))
        assert out.shape == ref.shape, (out.shape, ref.shape)
        # bf16 operands / f32 accumulation -> ~1% worst-case relative error.
        if not bool(jnp.allclose(out, ref, atol=2e-2, rtol=2e-2)):
            err = float(jnp.max(jnp.abs(out - ref)))
            raise AssertionError(f"mismatch in config {i}: max abs err {err}")
    print("KERNEL_OK")
</pallas_src>

<mosaic_0001>
module attributes {stable_mosaic.version = 11 : i64} {
  func.func @_conv1x1_bn_relu_kernel(%arg0: i32, %arg1: memref<128x128xbf16, #tpu.memory_space<vmem>>, %arg2: memref<128x128xbf16, #tpu.memory_space<vmem>>, %arg3: memref<1x128xf32, #tpu.memory_space<vmem>>, %arg4: memref<128x128xbf16, #tpu.memory_space<vmem>>) attributes {dimension_semantics = [#tpu.dimension_semantics<parallel>], iteration_bounds = array<i64: 1>, scalar_prefetch = 0 : i64, scratch_operands = 0 : i64, tpu.core_type = #tpu.core_type<tc>, window_params = [{transform_indices = @transform_0, window_bounds = array<i64: 128, 128>}, {pipeline_mode = #tpu.pipeline_mode<synchronous>, transform_indices = @transform_1, window_bounds = array<i64: 128, 128>}, {pipeline_mode = #tpu.pipeline_mode<synchronous>, transform_indices = @transform_2, window_bounds = array<i64: 1, 128>}, {transform_indices = @transform_3, window_bounds = array<i64: 128, 128>}]} {
    %c0 = arith.constant 0 : index
    %c0_0 = arith.constant 0 : index
    %0 = vector.load %arg1[%c0, %c0_0] : memref<128x128xbf16, #tpu.memory_space<vmem>>, vector<128x128xbf16>
    %c0_1 = arith.constant 0 : index
    %c0_2 = arith.constant 0 : index
    %1 = vector.load %arg2[%c0_1, %c0_2] : memref<128x128xbf16, #tpu.memory_space<vmem>>, vector<128x128xbf16>
    %cst = arith.constant dense<0.000000e+00> : vector<128x128xf32>
    %2 = tpu.matmul %0, %1, %cst {dimension_numbers = #tpu.dot_dimension_numbers<[1], [0], [0], [1], [0, 0, 1, 1], [], []>} : vector<128x128xbf16>, vector<128x128xbf16>, vector<128x128xf32> -> vector<128x128xf32>
    %c0_3 = arith.constant 0 : index
    %c0_4 = arith.constant 0 : index
    %3 = vector.load %arg3[%c0_3, %c0_4] : memref<1x128xf32, #tpu.memory_space<vmem>>, vector<1x128xf32>
    %4 = vector.broadcast %3 : vector<1x128xf32> to vector<128x128xf32>
    %5 = arith.addf %2, %4 : vector<128x128xf32>
    %cst_5 = arith.constant 0.000000e+00 : f32
    %6 = vector.broadcast %cst_5 : f32 to vector<128x128xf32>
    %7 = arith.maximumf %5, %6 : vector<128x128xf32>
    %8 = arith.truncf %7 : vector<128x128xf32> to vector<128x128xbf16>
    %c0_6 = arith.constant 0 : index
    %c0_7 = arith.constant 0 : index
    %9 = vector.load %arg4[%c0_6, %c0_7] : memref<128x128xbf16, #tpu.memory_space<vmem>>, vector<128x128xbf16>
    tpu.vector_store %arg4[%c0_6, %c0_7], %8 {strides = array<i32>} : memref<128x128xbf16, #tpu.memory_space<vmem>>, vector<128x128xbf16>,
    return
  }
  func.func @transform_0(%arg0: i32) -> (i32, i32) {
    %c0_i32 = arith.constant 0 : i32
    %c0_i32_0 = arith.constant 0 : i32
    return %arg0, %c0_i32 : i32, i32
  }
  func.func @transform_1(%arg0: i32) -> (i32, i32) {
    %c0_i32 = arith.constant 0 : i32
    %c0_i32_0 = arith.constant 0 : i32
    %c0_i32_1 = arith.constant 0 : i32
    return %c0_i32, %c0_i32_0 : i32, i32
  }
  func.func @transform_2(%arg0: i32) -> (i32, i32) {
    %c0_i32 = arith.constant 0 : i32
    %c0_i32_0 = arith.constant 0 : i32
    %c0_i32_1 = arith.constant 0 : i32
    return %c0_i32, %c0_i32_0 : i32, i32
  }
  func.func @transform_3(%arg0: i32) -> (i32, i32) {
    %c0_i32 = arith.constant 0 : i32
    %c0_i32_0 = arith.constant 0 : i32
    return %arg0, %c0_i32 : i32, i32
  }
}

</mosaic_0001>

<bundles_post_ra>
// kernel: tpu_custom_call.1
= control target key start
LH: loop header
LB: loop body
LE: loop exit
PB: predicated region body
PF: predicated region fallthrough
CT: control target
= control target key end

     0   :  { %8 = vsyncpa [#allocation3], 0  ;;  %s683_s0 = inlined_call_operand.hbm [shape: bf16[128,128], index: 0, kind: input, shape index: {}]   ;;  %s684_s1 = inlined_call_operand.hbm [shape: bf16[128,128], index: 1, kind: input, shape index: {}]   ;;  %s685_s2 = inlined_call_operand.vmem [shape: f32[1,128], index: 2, kind: input, shape index: {}]   ;;  %s686_s3 = inlined_call_operand.hbm [shape: bf16[128,128], index: 3, kind: output, shape index: {}]  }
   0x1   :  { %9 = vsyncpa [#allocation6], 0 }
   0x2   :  { %10 = vsyncpa [#allocation4], 0  ;;  %s637_s12 = smov [#allocation2]  }
   0x3   :  { %s16_s13 = sshll.u32 %s637_s12, 4  ;;  %s17_s13 = int_to_ptr.vmem [resolvable:$true] %s16_s13 }
   0x4   :  { %s579_s14 = scalar_lea.vmem %s17_s13, 1024  ;;  %p584_p1 = scmp.lt.s32.totalorder %s17_s13, %s17_s13 }
   0x5   :  { %p580_p0 = scmp.ne.s32.totalorder %s17_s13, %s579_s14  ;;  %p585_p2 = scmp.lt.s32.totalorder %s579_s14, %s579_s14 }
   0x7   :  { %p586_p3 = por %p585_p2, %p584_p1 }
   0x9   :  { %p587_p4 = pnand %p586_p3, %p580_p0 }
   0xb   :  { %590 = shalt.err (!%p587_p4)
}
   0xc   :  { %s638_s15 = smov 64   ;;  %s639_s16 = smov 4  }
   0xd   :  { %22 = dma.hbm_to_vmem [thread:$0]  %s683_s0, 1024, %s17_s13, [#allocation3], %s638_s15, %s638_s15, %s639_s16  }
   0xe   :  { %s640_s19 = smov [#allocation5]  }
   0xf   :  { %s28_s20 = sshll.u32 %s640_s19, 4  ;;  %s29_s20 = int_to_ptr.vmem [resolvable:$true] %s28_s20 }
  0x10   :  { %s599_s21 = scalar_lea.vmem %s29_s20, 1024  ;;  %p604_p6 = scmp.lt.s32.totalorder %s29_s20, %s29_s20 }
  0x11   :  { %p600_p5 = scmp.ne.s32.totalorder %s29_s20, %s599_s21  ;;  %p605_p7 = scmp.lt.s32.totalorder %s599_s21, %s599_s21 }
  0x13   :  { %p606_p8 = por %p605_p7, %p604_p6 }
  0x15   :  { %p607_p9 = pnand %p606_p8, %p600_p5 }
  0x17   :  { %610 = shalt.err (!%p607_p9)
}
  0x18   :  { %34 = dma.hbm_to_vmem [thread:$0]  %s684_s1, 1024, %s29_s20, [#allocation6], %s638_s15, %s638_s15, %s639_s16  }
  0x19   :  { %631 = dma.done.wait [#allocation3], 1024  }
  0x1a   :  { %632 = vsyncadd [#allocation3], 4294966272 }
  0x1b   :  { %633 = dma.done.wait [#allocation6], 1024  }
  0x1c   :  { %634 = vsyncadd [#allocation6], 4294966272  ;;  %v555_v0 = vld [vmem:[#allocation5 + $0x38] sm:$0xff]   ;;  %v556_v1 = vld [vmem:[#allocation5 + $0x30] sm:$0xff]  }
  0x1d   :  { %502 = vmatprep.subr.bf16.mxu0 %v555_v0  ;;  %534 = vmatprep.subr.bf16.mxu1 %v555_v0  ;;  %v557_v2 = vld [vmem:[#allocation5 + $0x28] sm:$0xff]   ;;  %v558_v3 = vld [vmem:[#allocation5 + $0x20] sm:$0xff]   ;;  %v559_v6 = vld [vmem:[#allocation5 + $0x18] sm:$0xff]  }
  0x1e   :  { %503 = vmatpush3.bf16.msra.mxu0 %v555_v0  ;;  %542 = vmatpush3.bf16.msra.mxu1 %v555_v0  ;;  %v563_v4 = vld [vmem:[#allocation2] sm:$0xff]   ;;  %v560_v7 = vld [vmem:[#allocation5 + $0x10] sm:$0xff]   ;;  %v561_v8 = vld [vmem:[#allocation5 + $0x8] sm:$0xff]  }
  0x1f   :  { %504 = vmatprep.subr.bf16.mxu0 %v556_v1  ;;  %535 = vmatprep.subr.bf16.mxu1 %v556_v1  ;;  %v564_v5 = vld [vmem:[#allocation2 + $0x20] sm:$0xff]   ;;  %v565_v10 = vld [vmem:[#allocation2 + $0x8] sm:$0xff]   ;;  %v567_v12 = vld [vmem:[#allocation2 + $0x10] sm:$0xff]  }
  0x20   :  { %518 = vmatprep.mubr.bf16.mxu0 %v563_v4  ;;  %526 = vmatprep.mubr.bf16.mxu1 %v564_v5  ;;  %v562_v9 = vld [vmem:[#allocation5] sm:$0xff]   ;;  %v566_v11 = vld [vmem:[#allocation2 + $0x28] sm:$0xff]   ;;  %v568_v13 = vld [vmem:[#allocation2 + $0x30] sm:$0xff]  }
  0x21   :  { %v569_v14 = vld [vmem:[#allocation2 + $0x18] sm:$0xff]   ;;  %v390_v16 = vld [vmem:[%s685_s2] ss:$0 sm:$0xff]  ;;  %s641_s2 = smov [#allocation7]  }
  0x22   :  { %505 = vmatpush3.bf16.msra.mxu0 %v556_v1  ;;  %543 = vmatpush3.bf16.msra.mxu1 %v556_v1  ;;  %v570_v15 = vld [vmem:[#allocation2 + $0x38] sm:$0xff]   ;;  %s377_s24 = sshll.u32 %s641_s2, 4  ;;  %s378_s24 = int_to_ptr.vmem [resolvable:$true] %s377_s24 }
  0x23   :  { %506 = vmatprep.subr.bf16.mxu0 %v557_v2  ;;  %536 = vmatprep.subr.bf16.mxu1 %v557_v2  ;;  %s611_s25 = scalar_lea.vmem %s378_s24, 1024  ;;  %p616_p11 = scmp.lt.s32.totalorder %s378_s24, %s378_s24 }
  0x24   :  { %p612_p10 = scmp.ne.s32.totalorder %s378_s24, %s611_s25  ;;  %p617_p12 = scmp.lt.s32.totalorder %s611_s25, %s611_s25 }
  0x26   :  { %507 = vmatpush3.bf16.msra.mxu0 %v557_v2  ;;  %544 = vmatpush3.bf16.msra.mxu1 %v557_v2  ;;  %p618_p13 = por %p617_p12, %p616_p11 }
  0x27   :  { %508 = vmatprep.subr.bf16.mxu0 %v558_v3  ;;  %537 = vmatprep.subr.bf16.mxu1 %v558_v3 }
  0x28   :  { %p619_p0 = pnand %p618_p13, %p612_p10 }
  0x2a   :  { %509 = vmatpush3.bf16.msra.mxu0 %v558_v3  ;;  %545 = vmatpush3.bf16.msra.mxu1 %v558_v3 }
  0x2b   :  { %510 = vmatprep.subr.bf16.mxu0 %v559_v6  ;;  %538 = vmatprep.subr.bf16.mxu1 %v559_v6 }
  0x2e   :  { %511 = vmatpush3.bf16.msra.mxu0 %v559_v6  ;;  %546 = vmatpush3.bf16.msra.mxu1 %v559_v6 }
  0x2f   :  { %512 = vmatprep.subr.bf16.mxu0 %v560_v7  ;;  %539 = vmatprep.subr.bf16.mxu1 %v560_v7 }
  0x32   :  { %513 = vmatpush3.bf16.msra.mxu0 %v560_v7  ;;  %547 = vmatpush3.bf16.msra.mxu1 %v560_v7 }
  0x33   :  { %514 = vmatprep.subr.bf16.mxu0 %v561_v8  ;;  %540 = vmatprep.subr.bf16.mxu1 %v561_v8 }
  0x36   :  { %515 = vmatpush3.bf16.msra.mxu0 %v561_v8  ;;  %548 = vmatpush3.bf16.msra.mxu1 %v561_v8 }
  0x37   :  { %516 = vmatprep.subr.bf16.mxu0 %v562_v9  ;;  %541 = vmatprep.subr.bf16.mxu1 %v562_v9 }
  0x3a   :  { %517 = vmatpush3.bf16.msra.mxu0 %v562_v9  ;;  %549 = vmatpush3.bf16.msra.mxu1 %v562_v9 }
  0x3d   :  { %519 = vmatmul.mubr.bf16.vlgmr.msra.gmra.mxu0 %v565_v10  ;;  %527 = vmatmul.mubr.bf16.vlgmr.msra.gmra.mxu1 %v566_v11 }
  0x3e   :  { %522 = vmatprep.mubr.bf16.mxu0 %v567_v12  ;;  %530 = vmatprep.mubr.bf16.mxu1 %v568_v13 }
  0x45   :  { %523 = vmatmul.mubr.bf16.gmra.mxu0 %v569_v14  ;;  %531 = vmatmul.mubr.bf16.gmra.mxu1 %v570_v15 }
  0xfd   :  { %v520_v17 = vpop.f32.mrf.mxu0  ;;  %v528_v18 = vpop.f32.mrf.mxu1 }
  0xfe   :  { %v222_v19 = vadd.f32 %v520_v17, %v390_v16  ;;  %v254_v20 = vadd.f32 %v528_v18, %v390_v16 }
  0xff   :  { %v213_v21 = vpop.f32.mrf.mxu0  ;;  %v245_v22 = vpop.f32.mrf.mxu1 }
 0x100   :  { %v214_v23 = vadd.f32 %v390_v16, %v213_v21  ;;  %v246_v24 = vadd.f32 %v390_v16, %v245_v22  ;;  %v278_v29 = vmax.f32 %v222_v19, 0.0  ;;  %v286_v30 = vmax.f32 %v254_v20, 0.0 }
 0x101   :  { %v521_v25 = vpop.f32.mrf.mxu0  ;;  %v529_v26 = vpop.f32.mrf.mxu1 }
 0x102   :  { %v225_v27 = vadd.f32 %v521_v25, %v390_v16  ;;  %v257_v28 = vadd.f32 %v529_v26, %v390_v16  ;;  %v276_v37 = vmax.f32 %v214_v23, 0.0  ;;  %v284_v38 = vmax.f32 %v246_v24, 0.0 }
 0x103   :  { %v216_v31 = vpop.f32.mrf.mxu0  ;;  %v248_v32 = vpop.f32.mrf.mxu1 }
 0x104   :  { %v279_v33 = vmax.f32 %v225_v27, 0.0  ;;  %v287_v34 = vmax.f32 %v257_v28, 0.0  ;;  %v217_v35 = vadd.f32 %v390_v16, %v216_v31  ;;  %v249_v36 = vadd.f32 %v390_v16, %v248_v32 }
 0x105   :  { %v524_v39 = vpop.f32.mrf.mxu0  ;;  %v532_v40 = vpop.f32.mrf.mxu1 }
 0x106   :  { %v447_v41 = vpack.c.bf16 %v279_v33, %v278_v29  ;;  %v467_v42 = vpack.c.bf16 %v287_v34, %v286_v30  ;;  %v277_v43 = vmax.f32 %v217_v35, 0.0  ;;  %v285_v44 = vmax.f32 %v249_v36, 0.0 }
 0x107   :  { %v238_v45 = vadd.f32 %v524_v39, %v390_v16  ;;  %v270_v46 = vadd.f32 %v532_v40, %v390_v16  ;;  %v229_v47 = vpop.f32.mrf.mxu0  ;;  %v261_v48 = vpop.f32.mrf.mxu1 }
 0x108   :  { %479 = vst [vmem:[#allocation7 + $0x8] sm:$0xff] %v447_v41   ;;  %483 = vst [vmem:[#allocation7 + $0x28] sm:$0xff] %v467_v42   ;;  %v442_v49 = vpack.c.bf16 %v277_v43, %v276_v37  ;;  %v462_v50 = vpack.c.bf16 %v285_v44, %v284_v38  ;;  %v230_v51 = vadd.f32 %v390_v16, %v229_v47 }
 0x109   :  { %v262_v52 = vadd.f32 %v390_v16, %v261_v48  ;;  %v525_v53 = vpop.f32.mrf.mxu0  ;;  %v533_v54 = vpop.f32.mrf.mxu1  ;;  %v282_v57 = vmax.f32 %v238_v45, 0.0  ;;  %v290_v58 = vmax.f32 %v270_v46, 0.0 }
 0x10a   :  { %443 = vst [vmem:[#allocation7] sm:$0xff] %v442_v49   ;;  %482 = vst [vmem:[#allocation7 + $0x20] sm:$0xff] %v462_v50   ;;  %v241_v55 = vadd.f32 %v525_v53, %v390_v16  ;;  %v273_v56 = vadd.f32 %v533_v54, %v390_v16  ;;  %v280_v1 = vmax.f32 %v230_v51, 0.0 }
 0x10b   :  { %v232_v59 = vpop.f32.mrf.mxu0  ;;  %v264_v60 = vpop.f32.mrf.mxu1  ;;  %v288_v2 = vmax.f32 %v262_v52, 0.0 }
 0x10c   :  { %v283_v61 = vmax.f32 %v241_v55, 0.0  ;;  %v291_v62 = vmax.f32 %v273_v56, 0.0  ;;  %v233_v63 = vadd.f32 %v390_v16, %v232_v59  ;;  %v265_v0 = vadd.f32 %v390_v16, %v264_v60 }
 0x10e   :  { %v457_v3 = vpack.c.bf16 %v283_v61, %v282_v57  ;;  %v477_v4 = vpack.c.bf16 %v291_v62, %v290_v58  ;;  %v281_v5 = vmax.f32 %v233_v63, 0.0  ;;  %v289_v6 = vmax.f32 %v265_v0, 0.0 }
 0x110   :  { %481 = vst [vmem:[#allocation7 + $0x18] sm:$0xff] %v457_v3   ;;  %485 = vst [vmem:[#allocation7 + $0x38] sm:$0xff] %v477_v4   ;;  %v452_v7 = vpack.c.bf16 %v281_v5, %v280_v1  ;;  %v472_v8 = vpack.c.bf16 %v289_v6, %v288_v2 }
 0x112   :  { %480 = vst [vmem:[#allocation7 + $0x10] sm:$0xff] %v452_v7   ;;  %484 = vst [vmem:[#allocation7 + $0x30] sm:$0xff] %v472_v8  }
 0x113   :  { %622 = shalt.err (!%p619_p0)
}
 0x114   :  { %383 = dma.vmem_to_hbm [thread:$0]  %s378_s24, 1024, %s686_s3, [#allocation4], %s638_s15, %s638_s15, %s639_s16  }
 0x115   :  { %635 = dma.done.wait [#allocation4], 1024  }
 0x116   :  { %636 = vsyncadd [#allocation4], 4294966272 }
 0x117   :  { %387 = vsyncpa [#allocation3], 1 }
 0x118   :  { %388 = vsyncpa [#allocation6], 1 }
 0x119   :  { %389 = vsyncpa [#allocation4], 1 }

</bundles_post_ra>
